<compile_context>
chip_gen: v6e
topology: v6e:2x2x1
jax: 0.10.0
libtpu: 0.0.40
codegen_flags: <defaults>
</compile_context>

<pallas_src>
import math

import jax
import jax.numpy as jnp
from jax import lax
from jax.experimental import pallas as pl
from jax.experimental.pallas import tpu as pltpu


def _attn_kernel(vl_ref, q_ref, k_ref, v_ref, o_ref):
    """One grid step == Bt batch elements.

    vl_ref : VMEM (Bt, 1, 1) int32 valid lengths for this batch block
    q_ref  : VMEM (Bt, Q, D)
    k_ref  : VMEM (Bt, K, D)
    v_ref  : VMEM (Bt, K, Dv)
    o_ref  : VMEM (Bt, Q, Dv)
    """
    q = q_ref[...]          # (Bt, Q, D)   native dtype (bf16 stays bf16)
    k = k_ref[...]          # (Bt, K, D)
    v = v_ref[...]          # (Bt, K, Dv)

    d = q.shape[-1]
    # Fold the 1/sqrt(d) scale into Q (Bt*Q*D mults, not Bt*Q*K on the scores).
    q = q * jnp.asarray(1.0 / math.sqrt(d), q.dtype)

    # scores = (Q/sqrt(d)) @ K^T: batched MXU matmul contracting the last dims
    # (no materialized transpose), f32 accumulate.
    scores = jnp.einsum("bqd,bkd->bqk", q, k,
                        preferred_element_type=jnp.float32)     # (Bt, Q, K)

    # masked_softmax: key positions >= valid_len[b] get -1e6 before softmax.
    # Single broadcast compare against the (Bt,1,1) valid-length block.
    col = lax.broadcasted_iota(jnp.int32, scores.shape, 2)      # key index
    scores = jnp.where(col < vl_ref[...], scores, jnp.float32(-1000000.0))

    # numerically-stable softmax over the key axis (VPU + EUP)
    m = jnp.max(scores, axis=-1, keepdims=True)
    e = jnp.exp(scores - m)
    denom = jnp.sum(e, axis=-1, keepdims=True)
    weights = e * pl.reciprocal(denom, approx=True)             # (Bt, Q, K)

    # out = weights @ V: batched MXU matmul, f32 accumulate.
    out = jnp.einsum("bqk,bkv->bqv", weights.astype(v.dtype), v,
                     preferred_element_type=jnp.float32)        # (Bt, Q, Dv)
    o_ref[...] = out.astype(o_ref.dtype)


def _pick_block_b(b, max_bt=8):
    """Batch elements per grid step.

    Largest divisor of b that is <= max_bt AND leaves at least 2 grid steps
    when b >= 2, so the "parallel" grid axis actually feeds both v7x TCs.
    """
    cap = max(1, min(max_bt, b // 2)) if b >= 2 else 1
    bt = cap
    while b % bt:
        bt -= 1
    return bt


def dot_product_attention(queries, keys, values, valid_lens):
    """queries (B,Q,D), keys (B,K,D), values (B,K,Dv), valid_lens (B,) int32."""
    B, Q, D = queries.shape
    _, K, _ = keys.shape
    Dv = values.shape[-1]

    bt = _pick_block_b(B)

    # valid_lens as a (B,1,1) int32 VMEM input -> one broadcast select in-kernel.
    vl = valid_lens.astype(jnp.int32).reshape(B, 1, 1)

    grid_spec = pltpu.PrefetchScalarGridSpec(
        num_scalar_prefetch=0,
        grid=(B // bt,),
        in_specs=[
            pl.BlockSpec((bt, 1, 1), lambda i: (i, 0, 0)),
            pl.BlockSpec((bt, Q, D), lambda i: (i, 0, 0)),
            pl.BlockSpec((bt, K, D), lambda i: (i, 0, 0)),
            pl.BlockSpec((bt, K, Dv), lambda i: (i, 0, 0)),
        ],
        out_specs=pl.BlockSpec((bt, Q, Dv), lambda i: (i, 0, 0)),
    )

    itemsize = queries.dtype.itemsize
    cost = pl.CostEstimate(
        flops=2 * B * Q * K * (D + Dv),
        transcendentals=B * Q * K,                       # exp in softmax
        bytes_accessed=(B * Q * D + B * K * D + B * K * Dv + B * Q * Dv)
        * itemsize
        + B * 4,
    )

    out = pl.pallas_call(
        _attn_kernel,
        out_shape=jax.ShapeDtypeStruct((B, Q, Dv), queries.dtype),
        grid_spec=grid_spec,
        compiler_params=pltpu.CompilerParams(
            dimension_semantics=("parallel",),           # megacore sharding on v7x
            vmem_limit_bytes=48 * 1024 * 1024,           # headroom under v7x 64 MiB
        ),
        cost_estimate=cost,
    )(vl, queries, keys, values)

    return out


def _reference(queries, keys, values, valid_lens):
    """Pure-JAX reference mirroring the PyTorch forward."""
    d = queries.shape[-1]
    scores = jnp.einsum("bqd,bkd->bqk", queries, keys) / math.sqrt(d)
    col = jnp.arange(keys.shape[1])[None, None, :]
    mask = col < valid_lens[:, None, None]
    scores = jnp.where(mask, scores, -1000000.0)
    weights = jax.nn.softmax(scores, axis=-1)
    return jnp.einsum("bqk,bkv->bqv", weights, values)


if __name__ == "__main__":
    key = jax.random.PRNGKey(0)
    kq, kk, kv = jax.random.split(key, 3)

    # small shapes consistent with the module's bmm-attention forward
    B, Q, K, D, Dv = 2, 8, 16, 16, 32
    queries = jax.random.normal(kq, (B, Q, D), dtype=jnp.float32)
    keys = jax.random.normal(kk, (B, K, D), dtype=jnp.float32)
    values = jax.random.normal(kv, (B, K, Dv), dtype=jnp.float32)
    valid_lens = jnp.array([5, 12], dtype=jnp.int32)

    out = dot_product_attention(queries, keys, values, valid_lens)
    out = jax.block_until_ready(out)

    ref = _reference(queries, keys, values, valid_lens)
    assert out.shape == (B, Q, Dv)
    # slightly looser tolerance: approx (EUP) reciprocal in the softmax denom
    assert jnp.allclose(out, ref, atol=2e-3, rtol=2e-3), "mismatch vs reference"

    print("KERNEL_OK")
</pallas_src>

<mosaic_0001>
module attributes {stable_mosaic.version = 11 : i64} {
  func.func @_attn_kernel(%arg0: i32, %arg1: memref<1x1x1xi32, #tpu.memory_space<vmem>>, %arg2: memref<1x8x16xf32, #tpu.memory_space<vmem>>, %arg3: memref<1x16x16xf32, #tpu.memory_space<vmem>>, %arg4: memref<1x16x32xf32, #tpu.memory_space<vmem>>, %arg5: memref<1x8x32xf32, #tpu.memory_space<vmem>>) attributes {dimension_semantics = [#tpu.dimension_semantics<parallel>], iteration_bounds = array<i64: 2>, scalar_prefetch = 0 : i64, scratch_operands = 0 : i64, tpu.core_type = #tpu.core_type<tc>, window_params = [{transform_indices = @transform_0, window_bounds = array<i64: 1, 1, 1>}, {transform_indices = @transform_1, window_bounds = array<i64: 1, 8, 16>}, {transform_indices = @transform_2, window_bounds = array<i64: 1, 16, 16>}, {transform_indices = @transform_3, window_bounds = array<i64: 1, 16, 32>}, {transform_indices = @transform_4, window_bounds = array<i64: 1, 8, 32>}]} {
    %c0 = arith.constant 0 : index
    %c0_0 = arith.constant 0 : index
    %c0_1 = arith.constant 0 : index
    %0 = vector.load %arg2[%c0, %c0_0, %c0_1] : memref<1x8x16xf32, #tpu.memory_space<vmem>>, vector<1x8x16xf32>
    %c0_2 = arith.constant 0 : index
    %c0_3 = arith.constant 0 : index
    %c0_4 = arith.constant 0 : index
    %1 = vector.load %arg3[%c0_2, %c0_3, %c0_4] : memref<1x16x16xf32, #tpu.memory_space<vmem>>, vector<1x16x16xf32>
    %c0_5 = arith.constant 0 : index
    %c0_6 = arith.constant 0 : index
    %c0_7 = arith.constant 0 : index
    %2 = vector.load %arg4[%c0_5, %c0_6, %c0_7] : memref<1x16x32xf32, #tpu.memory_space<vmem>>, vector<1x16x32xf32>
    %cst = arith.constant 2.500000e-01 : f32
    %3 = vector.broadcast %cst : f32 to vector<1x8x16xf32>
    %4 = arith.mulf %0, %3 : vector<1x8x16xf32>
    "tpu.trace_start"() <{level = 10 : i32, message = "bqd,bkd->bqk"}> : () -> ()
    %cst_8 = arith.constant dense<0.000000e+00> : vector<1x8x16xf32>
    %5 = tpu.matmul %4, %1, %cst_8 {dimension_numbers = #tpu.dot_dimension_numbers<[2], [2], [1], [1], [0, 0, 0, 1, 1, 1], [0], [0]>} : vector<1x8x16xf32>, vector<1x16x16xf32>, vector<1x8x16xf32> -> vector<1x8x16xf32>
    "tpu.trace_stop"() : () -> ()
    %6 = tpu.iota {dimensions = array<i32: 2>} : vector<1x8x16xi32>
    %c0_9 = arith.constant 0 : index
    %c0_10 = arith.constant 0 : index
    %c0_11 = arith.constant 0 : index
    %7 = vector.load %arg1[%c0_9, %c0_10, %c0_11] : memref<1x1x1xi32, #tpu.memory_space<vmem>>, vector<1x1x1xi32>
    %8 = vector.broadcast %7 : vector<1x1x1xi32> to vector<1x8x16xi32>
    %9 = arith.cmpi slt, %6, %8 : vector<1x8x16xi32>
    %cst_12 = arith.constant -1.000000e+06 : f32
    %10 = vector.broadcast %cst_12 : f32 to vector<1x8x16xf32>
    %11 = arith.select %9, %5, %10 : vector<1x8x16xi1>, vector<1x8x16xf32>
    %cst_13 = arith.constant dense<0xFF800000> : vector<1x8xf32>
    %12 = vector.multi_reduction <maximumf>, %11, %cst_13 [2] : vector<1x8x16xf32> to vector<1x8xf32>
    %13 = vector.shape_cast %12 : vector<1x8xf32> to vector<1x8x1xf32>
    %14 = vector.broadcast %13 : vector<1x8x1xf32> to vector<1x8x16xf32>
    %15 = arith.subf %11, %14 : vector<1x8x16xf32>
    %16 = math.exp %15 : vector<1x8x16xf32>
    %cst_14 = arith.constant dense<0.000000e+00> : vector<1x8xf32>
    %17 = vector.multi_reduction <add>, %16, %cst_14 [2] : vector<1x8x16xf32> to vector<1x8xf32>
    %18 = vector.shape_cast %17 : vector<1x8xf32> to vector<1x8x1xf32>
    %19 = tpu.reciprocal %18 {approx = true} : vector<1x8x1xf32> -> vector<1x8x1xf32>
    %20 = vector.broadcast %19 : vector<1x8x1xf32> to vector<1x8x16xf32>
    %21 = arith.mulf %16, %20 : vector<1x8x16xf32>
    "tpu.trace_start"() <{level = 10 : i32, message = "bqk,bkv->bqv"}> : () -> ()
    %cst_15 = arith.constant dense<0.000000e+00> : vector<1x8x32xf32>
    %22 = tpu.matmul %21, %2, %cst_15 {dimension_numbers = #tpu.dot_dimension_numbers<[2], [1], [1], [2], [0, 0, 0, 1, 1, 2], [0], [0]>} : vector<1x8x16xf32>, vector<1x16x32xf32>, vector<1x8x32xf32> -> vector<1x8x32xf32>
    "tpu.trace_stop"() : () -> ()
    %c0_16 = arith.constant 0 : index
    %c0_17 = arith.constant 0 : index
    %c0_18 = arith.constant 0 : index
    %23 = vector.load %arg5[%c0_16, %c0_17, %c0_18] : memref<1x8x32xf32, #tpu.memory_space<vmem>>, vector<1x8x32xf32>
    tpu.vector_store %arg5[%c0_16, %c0_17, %c0_18], %22 {strides = array<i32>} : memref<1x8x32xf32, #tpu.memory_space<vmem>>, vector<1x8x32xf32>,
    return
  }
  func.func @transform_0(%arg0: i32) -> (i32, i32, i32) {
    %c0_i32 = arith.constant 0 : i32
    %c0_i32_0 = arith.constant 0 : i32
    %c0_i32_1 = arith.constant 0 : i32
    return %arg0, %c0_i32, %c0_i32_0 : i32, i32, i32
  }
  func.func @transform_1(%arg0: i32) -> (i32, i32, i32) {
    %c0_i32 = arith.constant 0 : i32
    %c0_i32_0 = arith.constant 0 : i32
    %c0_i32_1 = arith.constant 0 : i32
    return %arg0, %c0_i32, %c0_i32_0 : i32, i32, i32
  }
  func.func @transform_2(%arg0: i32) -> (i32, i32, i32) {
    %c0_i32 = arith.constant 0 : i32
    %c0_i32_0 = arith.constant 0 : i32
    %c0_i32_1 = arith.constant 0 : i32
    return %arg0, %c0_i32, %c0_i32_0 : i32, i32, i32
  }
  func.func @transform_3(%arg0: i32) -> (i32, i32, i32) {
    %c0_i32 = arith.constant 0 : i32
    %c0_i32_0 = arith.constant 0 : i32
    %c0_i32_1 = arith.constant 0 : i32
    return %arg0, %c0_i32, %c0_i32_0 : i32, i32, i32
  }
  func.func @transform_4(%arg0: i32) -> (i32, i32, i32) {
    %c0_i32 = arith.constant 0 : i32
    %c0_i32_0 = arith.constant 0 : i32
    %c0_i32_1 = arith.constant 0 : i32
    return %arg0, %c0_i32, %c0_i32_0 : i32, i32, i32
  }
}

</mosaic_0001>

<bundles_post_ra>
// kernel: tpu_custom_call.1
= control target key start
LH: loop header
LB: loop body
LE: loop exit
PB: predicated region body
PF: predicated region fallthrough
CT: control target
= control target key end

     0   :  { %s1180_s0 = inlined_call_operand.vmem [shape: s32[2,1,1], index: 0, kind: input, shape index: {}]   ;;  %s1181_s1 = inlined_call_operand.hbm [shape: f32[2,8,16], index: 1, kind: input, shape index: {}]   ;;  %s1182_s2 = inlined_call_operand.hbm [shape: f32[2,16,16], index: 2, kind: input, shape index: {}]   ;;  %s1183_s3 = inlined_call_operand.hbm [shape: f32[2,16,32], index: 3, kind: input, shape index: {}]   ;;  %s1184_s4 = inlined_call_operand.hbm [shape: f32[2,8,32], index: 4, kind: output, shape index: {}]  }
   0x1   :  { %1192 = sst [smem:[#allocation15_spill]] %s1182_s2 }
   0x2   :  { %9 = vsyncpa [#allocation3], 0 }
   0x3   :  { %11 = vsyncpa [#allocation3 + $0x1], 0 }
   0x4   :  { %12 = vsyncpa [#allocation6], 0 }
   0x5   :  { %14 = vsyncpa [#allocation6 + $0x1], 0 }
   0x6   :  { %15 = vsyncpa [#allocation4], 0 }
   0x7   :  { %17 = vsyncpa [#allocation4 + $0x1], 0  ;;  %s925_s15 = smov 0   ;;  %s927_s16 = smov 0  }
   0x8   :  { %s929_s17 = smov 0   ;;  %s931_s18 = smov 0  }
   0x9 LB: > { %1193 = sst [smem:[#allocation12_spill]] %s885_s17  ;;  %s946_s19 = sadd.s32 4294967295, %s889_s18   ;;  %s889_s18 = sphi %s931_s18, %s1210_s18   ;;  %s885_s17 = sphi %s929_s17, %s1212_s17   ;;  %s881_s16 = sphi %s927_s16, %s1214_s16   ;;  %s877_s15 = sphi %s925_s15, %s1213_s15  }
   0xa   : > { %s624_s20 = sadd.s32 4294967294, %s889_s18   ;;  %s950_s21 = sadd.s32 1, %s889_s18  }
   0xb   : > { %1194 = sst [smem:[#allocation13_spill]] %s950_s21  ;;  %s56_s22 = sadd.s32 1, %s885_s17 }
   0xc   : > { %s53_s23 = ssub.s32 %s889_s18, %s950_s21  ;;  %p63_p0 = scmp.ne.s32.totalorder %s885_s17, %s881_s16 }
   0xd   : > { %p54_p1 = scmp.eq.s32.totalorder %s53_s23, 0  ;;  %p64_p2 = scmp.eq.s32.totalorder %s889_s18, 0 }
   0xe   : > { %p69_p3 = scmp.ne.s32.totalorder %s881_s16, %s877_s15  ;;  %p70_p4 = scmp.eq.s32.totalorder %s946_s19, 0 }
   0xf   : > { %s962_s24 = scalar_select %p54_p1, %s885_s17, %s56_s22  }
  0x10   : > { %p65_p5 = por %p64_p2, %p63_p0  ;;  %p964_p6 = por %p70_p4, %p69_p3 }
  0x11   : > { %1195 = sst [smem:[#allocation14_spill]] %s962_s24  ;;  %p145_p7 = scmp.eq.s32.totalorder %s946_s19, 1 }
  0x12   : > { %s1196_s25 = scalar_select %p964_p6, 1, 0 }
  0x13   : > { %p151_p8 = scmp.eq.s32.totalorder %s624_s20, 1  ;;  %p693_p10 = scmp.lt.s32.totalorder %s889_s18, 2 }
  0x14   : > { %p971_p11 = por %p145_p7, %p63_p0  ;;  %s980_s28 = sand.u32 1, %s885_s17  }
  0x15   : > { %p975_p12 = por %p151_p8, %p69_p3  ;;  %p982_p13 = pnand %p693_p10, %p65_p5 }
  0x16   : > { %s1197_s26 = scalar_select %p971_p11, 1, 0 }
  0x17   : > { %s1198_s27 = scalar_select %p975_p12, 1, 0 }
  0x18   : > { %s195_s30 = sand.u32 1, %s889_s18   ;;  %s629_s5 = sshll.u32 %s980_s28, 4 }
  0x19   : > { %s649_s6 = sshll.u32 %s889_s18, 8  ;;  %s1200_s2 = sld [smem:[#allocation15_spill]] }
  0x1a   : > { %s199_s10 = scalar_lea.vmem [#allocation5], %s629_s5  ;;  %s1000_s12 = scalar_lea.sflag [#allocation6], %s195_s30 }
  0x1b   : > { %s206_s11 = sshll.u32 %s199_s10, 4  ;;  %p1006_p1 = pneg %p982_p13  ;;  %s998_s11 = int_to_ptr.vmem [resolvable:$true] %s206_s11 }
  0x1f   : > { %s994_s9 = scalar_lea.hbm %s1200_s2, %s649_s6  ;;  %s742_s23 = scalar_lea.hbm %s1200_s2, 512 }
  0x20   : > { %s737_s13 = scalar_lea.hbm %s994_s9, 256  ;;  %p743_p4 = scmp.lt.s32.totalorder %s994_s9, %s1200_s2 }
  0x21   : > { %p738_p0 = scmp.ne.s32.totalorder %s994_s9, %s737_s13  ;;  %p744_p5 = scmp.lt.s32.totalorder %s742_s23, %s737_s13 }
  0x23   : > { %p740_p2 = pnand %p1006_p1, %p738_p0  ;;  %p745_p7 = por %p744_p5, %p743_p4 }
  0x25   : > { %p741_p3 = pneg %p740_p2 }
  0x27   : > { %p746_p8 = pnand %p745_p7, %p741_p3 }
  0x29   : > { %749 = shalt.err (!%p746_p8)
}
  0x2a   : > { %s750_s30 = scalar_lea.vmem %s998_s11, 256  ;;  %s891_s10 = smov [#allocation5]  }
  0x2b   : > { %p751_p10 = scmp.ne.s32.totalorder %s998_s11, %s750_s30  ;;  %s755_s20 = sshll.u32 %s891_s10, 4  ;;  %s756_s20 = int_to_ptr.vmem [resolvable:$false] %s755_s20 }
  0x2c   : > { %s757_s22 = scalar_lea.vmem %s756_s20, 512  ;;  %p758_p9 = scmp.lt.s32.totalorder %s998_s11, %s756_s20 }
  0x2d   : > { %p753_p0 = pnand %p751_p10, %p1006_p1  ;;  %p759_p12 = scmp.lt.s32.totalorder %s757_s22, %s750_s30 }
  0x2f   : > { %p754_p2 = pneg %p753_p0  ;;  %p760_p11 = por %p759_p12, %p758_p9 }
  0x31   : > { %p761_p6 = pnand %p760_p11, %p754_p2 }
  0x33   : > { %764 = shalt.err (!%p761_p6)
}
  0x34   : > { %s1187_s13 = smov 128   ;;  %s1188_s23 = smov 8  }
  0x35   : > { %685 = dma.hbm_to_vmem [thread:$0]  (!%p982_p13), %s994_s9, 256, %s998_s11, %s1000_s12, %s1187_s13, %s1187_s13, %s1188_s23  }
  0x36   : > { %s1037_s30 = scalar_lea.hbm %s1183_s3, %s649_s6  ;;  %s220_s10 = scalar_lea.vmem [#allocation7], %s629_s5 }
  0x37   : > { %s227_s20 = sshll.u32 %s220_s10, 4  ;;  %p635_p6 = scmp.ge.s32.totalorder %s889_s18, 1  ;;  %s1041_s20 = int_to_ptr.vmem [resolvable:$true] %s227_s20 }
  0x38   : > { %p235_p9 = scmp.lt.s32.totalorder %s889_s18, 3  ;;  %s627_s22 = sshll.u32 %s980_s28, 3 }
  0x39   : > { %s628_s2 = sshll.u32 %s889_s18, 7  ;;  %s181_s5 = scalar_lea.vmem [#allocation2], %s627_s22 }
  0x3a   : > { %p1047_p11 = pnand %p635_p6, %p235_p9  ;;  %s1054_s7 = scalar_lea.hbm %s1181_s1, %s628_s2 }
  0x3b   : > { %s188_s6 = sshll.u32 %s181_s5, 4  ;;  %s178_s8 = scalar_lea.sflag [#allocation3], %s980_s28  ;;  %s189_s6 = int_to_ptr.vmem [resolvable:$true] %s188_s6 }
  0x3c   : > { %s1202_s24 = scalar_select %p1047_p11, 1, 0 }
  0x3d   : > { %s765_s10 = scalar_lea.hbm %s1054_s7, 128  ;;  %s770_s17 = scalar_lea.hbm %s1181_s1, 256 }
  0x3e   : > { %p766_p12 = scmp.ne.s32.totalorder %s1054_s7, %s765_s10  ;;  %p771_p5 = scmp.lt.s32.totalorder %s1054_s7, %s1181_s1 }
  0x3f   : > { %p772_p7 = scmp.lt.s32.totalorder %s770_s17, %s765_s10 }
  0x40   : > { %p768_p3 = pnand %p766_p12, %p1006_p1 }
  0x41   : > { %p773_p8 = por %p772_p7, %p771_p5 }
  0x42   : > { %p769_p4 = pneg %p768_p3 }
  0x44   : > { %p774_p10 = pnand %p773_p8, %p769_p4 }
  0x46   : > { %777 = shalt.err (!%p774_p10)
}
  0x47   : > { %s778_s2 = scalar_lea.vmem %s189_s6, 128  ;;  %s894_s28 = smov [#allocation2]  }
  0x48   : > { %p779_p0 = scmp.ne.s32.totalorder %s189_s6, %s778_s2  ;;  %s783_s22 = sshll.u32 %s894_s28, 4  ;;  %s784_s22 = int_to_ptr.vmem [resolvable:$false] %s783_s22 }
  0x49   : > { %s785_s11 = scalar_lea.vmem %s784_s22, 256  ;;  %p786_p9 = scmp.lt.s32.totalorder %s189_s6, %s784_s22 }
  0x4a   : > { %p781_p2 = pnand %p779_p0, %p1006_p1  ;;  %p787_p12 = scmp.lt.s32.totalorder %s785_s11, %s778_s2 }
  0x4c   : > { %p782_p6 = pneg %p781_p2  ;;  %p788_p3 = por %p787_p12, %p786_p9 }
  0x4e   : > { %p789_p11 = pnand %p788_p3, %p782_p6 }
  0x50   : > { %792 = shalt.err (!%p789_p11)
}
  0x51   : > { %682 = dma.hbm_to_vmem [thread:$0]  (!%p982_p13), %s1054_s7, 128, %s189_s6, %s178_s8  }
  0x52   : > { %s793_s17 = scalar_lea.hbm %s1037_s30, 256  ;;  %s798_s23 = scalar_lea.hbm %s1183_s3, 512 }
  0x53   : > { %p794_p4 = scmp.ne.s32.totalorder %s1037_s30, %s793_s17  ;;  %p799_p11 = scmp.lt.s32.totalorder %s1037_s30, %s1183_s3 }
  0x54   : > { %p800_p8 = scmp.lt.s32.totalorder %s798_s23, %s793_s17 }
  0x55   : > { %p796_p5 = pnand %p794_p4, %p1006_p1 }
  0x56   : > { %p801_p10 = por %p800_p8, %p799_p11 }
  0x57   : > { %p797_p7 = pneg %p796_p5 }
  0x59   : > { %p802_p0 = pnand %p801_p10, %p797_p7 }
  0x5b   : > { %805 = shalt.err (!%p802_p0)
}
  0x5c   : > { %s806_s7 = scalar_lea.vmem %s1041_s20, 256  ;;  %s895_s6 = smov [#allocation7]  }
  0x5d   : > { %p807_p2 = scmp.ne.s32.totalorder %s1041_s20, %s806_s7  ;;  %s811_s8 = sshll.u32 %s895_s6, 4  ;;  %s812_s8 = int_to_ptr.vmem [resolvable:$false] %s811_s8 }
  0x5e   : > { %s813_s9 = scalar_lea.vmem %s812_s8, 512  ;;  %p814_p12 = scmp.lt.s32.totalorder %s1041_s20, %s812_s8 }
  0x5f   : > { %p809_p6 = pnand %p807_p2, %p1006_p1  ;;  %p815_p3 = scmp.lt.s32.totalorder %s813_s9, %s806_s7 }
  0x61   : > { %p810_p9 = pneg %p809_p6  ;;  %p816_p4 = por %p815_p3, %p814_p12 }
  0x63   : > { %p817_p5 = pnand %p816_p4, %p810_p9 }
  0x65   : > { %820 = shalt.err (!%p817_p5)
}
  0x66   : > { %s1203_s2 = smov 8   ;;  %s1204_s28 = smov 128  }
  0x67   : > { %688 = dma.hbm_to_vmem [thread:$0]  (!%p982_p13), %s1037_s30, 256, %s1041_s20, %s1000_s12, %s1204_s28, %s1204_s28, %s1203_s2  }
  0x68   : > { %p1205_p1 = scmp.ne.s32.totalorder %s1202_s24, 0 }
  0x69   : > { %s1100_s14 = sand.u32 (!%p1205_p1), 1, %s881_s16   ;;  %p1206_p7 = scmp.ne.s32.totalorder (!%p1205_p1), %s1196_s25, 0 }
  0x6a   : > { %239 = sbr.rel (%p1205_p1) target bundleno = 838 (0x346), region = 36  ;;  %s636_s22 = sshll.u32 (!%p1205_p1), %s1100_s14, 3 }
  0x6b   : > { %s242_s11 = scalar_lea.sflag (!%p1205_p1), [#allocation3], %s1100_s14  ;;  %s245_s29 = scalar_lea.vmem (!%p1205_p1), [#allocation2], %s636_s22 }
  0x6f   : > { %864 = dma.done.wait (%p1206_p7), %s242_s11, 128  }
  0x70   : > { %866 = vsyncadd (%p1206_p7), %s242_s11, 4294967168  ;;  %s250_s24 = sand.u32 1, %s946_s19   ;;  %s637_s12 = sshll.u32 %s1100_s14, 4 }
  0x71   : > { %s251_s30 = scalar_lea.sflag [#allocation6], %s250_s24  ;;  %s254_s20 = scalar_lea.vmem [#allocation5], %s637_s12 }
  0x72   : > { %868 = dma.done.wait (%p1206_p7), %s251_s30, 512  }
  0x73   : > { %870 = vsyncadd (%p1206_p7), %s251_s30, 4294966784  ;;  %p301_p13 = scmp.lt.s32.totalorder %s946_s19, 1  ;;  %v896_v0 = vmov 0.0   ;;  %vm897_vm0 = vmmov 0   ;;  %v898_v1 = vmov 0   ;;  %vm310_vm1 = vcmask 130048  }
  0x74   : > { %657 = vmatprep.subr.mxu0 %v896_v0  ;;  %661 = vmatprep.mubr.msk.f32.mxu0 %vm897_vm0, %v896_v0  ;;  %v306_v2 = vld [vmem:[%s254_s20 + $0x8] sm:$0xff]  ;;  %v305_v5 = vld [vmem:[%s254_s20] sm:$0xff]  ;;  %v390_v7 = vlaneseq  ;;  %s263_s25 = scalar_lea.vmem [#allocation7], %s637_s12  ;;  %s646_s5 = sshll.u32 %s946_s19, 7  ;;  %vm486_vm3 = vcmask 261120  }
  0x75   : > { %732 = vset.pattern.permute.xlu0 %v898_v1  ;;  %s302_s17 = scalar_select %p301_p13, %s946_s19, 1  ;;  %664 = vmatprep.subr.mxu1 %v896_v0  ;;  %v304_v3 = vld [vmem:[%s245_s29] sm:$0xff]  ;;  %v307_v20 = vld [vmem:[%s263_s25] sm:$0xff] }
  0x76   : > { %668 = vmatprep.mubr.msk.f32.mxu1 %vm897_vm0, %v896_v0  ;;  %658 = vmatpush3.xpose.msk.msra.mxu0 %vm310_vm1, %v306_v2  ;;  %v309_v6 = vmul.f32 0.25, %v304_v3  ;;  %v391_v8 = vand.u32 127, %v390_v7  ;;  %v308_v19 = vld [vmem:[%s263_s25 + $0x8] sm:$0xff]  ;;  %s300_s10 = scalar_lea.vmem [#allocation8], %s636_s22  ;;  %s1137_s9 = scalar_lea.hbm %s1184_s4, %s646_s5 }
  0x77   : > { %s303_s23 = scalar_lea.vmem %s1180_s0, %s302_s17  ;;  %659 = vmatprep.subr.mxu0 %v896_v0  ;;  %665 = vmatpush3.msra.mxu1 %v308_v19  ;;  %s502_s7 = sshll.u32 %s300_s10, 4  ;;  %s1139_s7 = int_to_ptr.vmem [resolvable:$true] %s502_s7 }
  0x78   : > { %v643_v4 = vld [vmem:[%s303_s23] ss:$0 sm:$0xff]  ;;  %666 = vmatprep.subr.mxu1 %v896_v0  ;;  %s489_s2 = scalar_lea.sflag [#allocation4], %s1100_s14  ;;  %s821_s28 = scalar_lea.vmem %s1139_s7, 128 }
  0x79   : > { %398 = vperm.xlu0 %732, %v643_v4   ;;  %667 = vmatpush3.msra.mxu1 %v307_v20  ;;  %p822_p11 = scmp.ne.s32.totalorder %s1139_s7, %s821_s28  ;;  %p1207_p8 = scmp.ne.s32.totalorder %s1197_s26, 0 }
  0x7a   : > { %660 = vmatpush3.xpose.msk.msra.mxu0 %vm310_vm1, %v305_v5  ;;  %s899_s19 = smov [#allocation8]  }
  0x7b   : > { %p823_p10 = pnand %p822_p11, %p1207_p8  ;;  %s825_s22 = sshll.u32 %s899_s19, 4  ;;  %s826_s22 = int_to_ptr.vmem [resolvable:$false] %s825_s22 }
  0x7c   : > { %s827_s11 = scalar_lea.vmem %s826_s22, 256  ;;  %p828_p2 = scmp.lt.s32.totalorder %s1139_s7, %s826_s22 }
  0x7d   : > { %662 = vmatmul.mubr.msk.f32.vlgmr.msra.gmra.mxu0 %vm310_vm1, %v309_v6  ;;  %p824_p0 = pneg %p823_p10  ;;  %p829_p6 = scmp.lt.s32.totalorder %s827_s11, %s821_s28 }
  0x7f   : > { %p830_p9 = por %p829_p6, %p828_p2 }
  0x81   : > { %p831_p12 = pnand %p830_p9, %p824_p0 }
  0xf4   : > { %v399_v9 = vpop.permute.xlu0 %398 }
  0xf5   : > { %vm400_vm2 = vcmp.lt.s32.totalorder %v391_v8, %v399_v9 }
 0x13d   : > { %v386_v10 = vpop.f32.mrf.mxu0 }
 0x13e   : > { %v401_v11 = vsel %vm400_vm2, %v386_v10, -1000000.0 }
 0x13f   : > { %v663_v12 = vpop.f32.mrf.mxu0  ;;  %v402_v13 = vsel %vm310_vm1, %v401_v11, -inf }
 0x140   : > { %403 = vmax.xlane.f32.xlu0 %v402_v13 }
 0x1c9   : > { %v404_v14 = vpop.xlane.xlu0 %403 }
 0x1ca   : > { %v405_v15 = vsub.f32 %v401_v11, %v404_v14 }
 0x1cc   : > { %v406_v16 = vmul.f32 1.442695, %v405_v15 }
 0x1ce   : > { %733 = vpow2.f32 %v406_v16 }
 0x1db   : > { %v734_v17 = vpop.eup %733 }
 0x1dc   : > { %v408_v18 = vsel %vm310_vm1, %v734_v17, 0.0 }
 0x1dd   : > { %409 = vadd.xlane.f32.xlu1 %v408_v18 }
 0x266   : > { %v410_v21 = vpop.xlane.xlu1 %409 }
 0x267   : > { %735 = vrcp.f32 %v410_v21 }
 0x274   : > { %v736_v22 = vpop.eup %735 }
 0x275   : > { %v412_v23 = vmul.f32 %v736_v22, %v734_v17 }
 0x277   : > { %669 = vmatmul.mubr.msk.f32.vlgmr.msra.gmra.mxu1 %vm310_vm1, %v412_v23 }
 0x337   : > { %v482_v24 = vpop.f32.mrf.mxu1 }
 0x338   : > { %487 = vst.msk [vmem:[%s300_s10] sm:$0xff] %vm486_vm3, %v482_v24 }
 0x339   : > { %v670_v25 = vpop.f32.mrf.mxu1 }
 0x33a   : > { %834 = shalt.err (!%p831_p12)
}
 0x33b   : > { %s835_s29 = scalar_lea.hbm %s1137_s9, 128  ;;  %s839_s12 = scalar_lea.hbm %s1184_s4, 256 }
 0x33c   : > { %p836_p3 = scmp.ne.s32.totalorder %s1137_s9, %s835_s29  ;;  %p840_p1 = scmp.lt.s32.totalorder %s1137_s9, %s1184_s4 }
 0x33d   : > { %p841_p7 = scmp.lt.s32.totalorder %s839_s12, %s835_s29 }
 0x33e   : > { %p837_p4 = pnand %p836_p3, %p1207_p8 }
 0x33f   : > { %p842_p13 = por %p841_p7, %p840_p1 }
 0x340   : > { %p838_p5 = pneg %p837_p4 }
 0x342   : > { %p843_p11 = pnand %p842_p13, %p838_p5 }
 0x344   : > { %846 = shalt.err (!%p843_p11)
}
 0x345   : > { %677 = dma.vmem_to_hbm [thread:$0]  (%p1207_p8), %s1139_s7, 128, %s1137_s9, %s489_s2  }
 0x346 PF: > { %s514_s17 = sand.u32 1, %s877_s15   ;;  %p1208_p10 = scmp.ne.s32.totalorder %s1198_s27, 0 }
 0x347   : > { %p1209_p0 = scmp.ge.s32.totalorder %s889_s18, 2  ;;  %s515_s21 = scalar_lea.sflag [#allocation4], %s514_s17 }
 0x349   : > { %p690_p2 = pnand %p1209_p0, %p1208_p10 }
 0x34b   : > { %p691_p6 = pneg %p690_p2 }
 0x34d   : > { %872 = dma.done.wait (%p691_p6), %s515_s21, 128  }
 0x34e   : > { %874 = vsyncadd (%p691_p6), %s515_s21, 4294967168  ;;  %s1210_s18 = sld [smem:[#allocation13_spill]]  ;;  %s1213_s15 = smov %s881_s16 }
 0x34f   : > { %s1211_s13 = sld [smem:[#allocation12_spill]] }
 0x350   : > { %s1212_s17 = sld [smem:[#allocation14_spill]] }
 0x354   : > { %p20_p9 = scmp.ge.s32.totalorder %s1210_s18, 4  }
 0x355   : > { %s1214_s16 = smov %s1211_s13 }
 0x356   :  { %22 = sbr.rel (!%p20_p9) target bundleno = 9 (0x9), region = 108 }
 0x35b   :  { %520 = vsyncpa [#allocation3], 1 }
 0x35c   :  { %522 = vsyncpa [#allocation3 + $0x1], 1 }
 0x35d   :  { %523 = vsyncpa [#allocation6], 1 }
 0x35e   :  { %525 = vsyncpa [#allocation6 + $0x1], 1 }
 0x35f   :  { %526 = vsyncpa [#allocation4], 1 }
 0x360   :  { %528 = vsyncpa [#allocation4 + $0x1], 1 }

</bundles_post_ra>
